<compile_context>
chip_gen: v5e
topology: v5e:2x2
jax: 0.10.0
libtpu: 0.0.40
codegen_flags: <defaults>
</compile_context>

<pallas_src>
import functools

import jax
import jax.numpy as jnp
from jax import lax
from jax.experimental import pallas as pl
from jax.experimental.pallas import tpu as pltpu


_PARAMS_1D = pltpu.CompilerParams(dimension_semantics=("parallel",))


# -----------------------------------------------------------------------------
# Pallas kernels
# -----------------------------------------------------------------------------
def _prep_kernel(x_ref, mean_ref, istd_ref, o_ref):
    # x: (1, H, W, Cp) f32 (channels already zero-padded to Cp in the wrapper).
    # o: (1, H+4, W+2, Cp) bf16 persistent layout: data at rows [2, H+2),
    #    cols [0, W); zero border rows/cols; normalized.
    h, w = x_ref.shape[1], x_ref.shape[2]
    val = (x_ref[0] - mean_ref[0]) * istd_ref[0]            # (H, W, Cp) f32
    o_ref[...] = jnp.zeros(o_ref.shape, o_ref.dtype)
    o_ref[0, 2:2 + h, 0:w, :] = val.astype(o_ref.dtype)


def _conv3x3_kernel(x_ref, w_ref, b_ref, o_ref, *, wp, h, apply_relu):
    # x_ref: (1, (H+4)*Wp, Cin) bf16 flat persistent layout (Wp = W+2).
    # w_ref: (9, Cin, Cout) bf16 (tap = 3*dh + dw), b_ref: (1, Cout) f32.
    # o_ref: (1, (H+4)*Wp, Cout) bf16 flat persistent layout.
    w_true = wp - 2
    rows = h * wp
    cout = o_ref.shape[-1]

    # 9 statically-shifted MXU matmuls with f32 accumulation.  Output flat rows
    # start at 2*wp (two zero pad rows on top), so every tap slice
    # [(dh+1)*wp + dw - 1, ... + rows) stays in bounds.
    acc = jnp.zeros((rows, cout), jnp.float32)
    for dh in range(3):
        for dw in range(3):
            start = (dh + 1) * wp + dw - 1                  # static shift
            patch = x_ref[0, pl.ds(start, rows), :]         # (rows, Cin)
            acc = acc + jnp.dot(patch, w_ref[dh * 3 + dw],
                                preferred_element_type=jnp.float32)

    # Fused epilogue: bias (+ ReLU), then keep the pad columns exactly zero.
    acc = acc + b_ref[...]
    if apply_relu:
        acc = jnp.maximum(acc, 0.0)
    col = lax.broadcasted_iota(jnp.int32, (rows, 1), 0) % wp
    acc = jnp.where(col < w_true, acc, 0.0)

    zero_halo = jnp.zeros((2 * wp, cout), o_ref.dtype)
    o_ref[0, pl.ds(0, 2 * wp), :] = zero_halo               # top pad rows
    o_ref[0, pl.ds(2 * wp, rows), :] = acc.astype(o_ref.dtype)
    o_ref[0, pl.ds((h + 2) * wp, 2 * wp), :] = zero_halo    # bottom pad rows


def _relu_kernel(x_ref, o_ref):
    # Only used when a conv's raw (pre-ReLU) output is requested by name.
    o_ref[...] = jnp.maximum(x_ref[...], 0)


def _maxpool_kernel(x_ref, o_ref):
    # x: (1, H+4, Wp/2, 2, C) column-paired persistent layout.
    # o: (1, H/2+4, W/2+2, C) persistent layout.
    hp, wph, c = x_ref.shape[1], x_ref.shape[2], x_ref.shape[4]
    h = hp - 4
    ho = h // 2
    a = x_ref[0, 2:2 + h]                                   # (H, wph, 2, C)
    wmax = jnp.max(a, axis=2)                               # (H, wph, C)
    hmax = jnp.max(wmax.reshape(ho, 2, wph, c), axis=1)     # (H/2, wph, C)
    o_ref[...] = jnp.zeros(o_ref.shape, o_ref.dtype)
    o_ref[0, 2:2 + ho, 0:wph, :] = hmax


# -----------------------------------------------------------------------------
# pallas_call wrappers
# -----------------------------------------------------------------------------
def prep_input(x_nhwc, mean, inv_std):
    # (N, H, W, Cp) f32 -> persistent layout (N, H+4, W+2, Cp) bf16, normalized.
    n, h, w, cp = x_nhwc.shape
    hp, wp = h + 4, w + 2
    return pl.pallas_call(
        _prep_kernel,
        out_shape=jax.ShapeDtypeStruct((n, hp, wp, cp), jnp.bfloat16),
        grid=(n,),
        in_specs=[
            pl.BlockSpec((1, h, w, cp), lambda i: (i, 0, 0, 0)),
            pl.BlockSpec((1, 1, 1, cp), lambda i: (0, 0, 0, 0)),
            pl.BlockSpec((1, 1, 1, cp), lambda i: (0, 0, 0, 0)),
        ],
        out_specs=pl.BlockSpec((1, hp, wp, cp), lambda i: (i, 0, 0, 0)),
        compiler_params=_PARAMS_1D,
    )(x_nhwc, mean.reshape(1, 1, 1, cp), inv_std.reshape(1, 1, 1, cp))


def conv3x3(act, w9, b, *, apply_relu):
    # act: (N, H+4, W+2, Cin) bf16 persistent layout; w9: (9, Cin, Cout) bf16;
    # b: (1, Cout) f32.  Returns (N, H+4, W+2, Cout) bf16 persistent layout.
    n, hp, wp, cin = act.shape
    h = hp - 4
    cout = w9.shape[-1]
    x_flat = act.reshape(n, hp * wp, cin)                   # free reshape

    out = pl.pallas_call(
        functools.partial(_conv3x3_kernel, wp=wp, h=h, apply_relu=apply_relu),
        out_shape=jax.ShapeDtypeStruct((n, hp * wp, cout), jnp.bfloat16),
        grid=(n,),
        in_specs=[
            pl.BlockSpec((1, hp * wp, cin), lambda i: (i, 0, 0)),
            pl.BlockSpec((9, cin, cout), lambda i: (0, 0, 0)),
            pl.BlockSpec((1, cout), lambda i: (0, 0)),
        ],
        out_specs=pl.BlockSpec((1, hp * wp, cout), lambda i: (i, 0, 0)),
        compiler_params=_PARAMS_1D,
    )(x_flat, w9, b)
    return out.reshape(n, hp, wp, cout)                     # free reshape


def relu(act):
    n, hp, wp, c = act.shape
    return pl.pallas_call(
        _relu_kernel,
        out_shape=jax.ShapeDtypeStruct(act.shape, act.dtype),
        grid=(n,),
        in_specs=[pl.BlockSpec((1, hp, wp, c), lambda i: (i, 0, 0, 0))],
        out_specs=pl.BlockSpec((1, hp, wp, c), lambda i: (i, 0, 0, 0)),
        compiler_params=_PARAMS_1D,
    )(act)


def maxpool2x2(act):
    # (N, H+4, W+2, C) -> (N, H/2+4, W/2+2, C), persistent layout preserved.
    n, hp, wp, c = act.shape
    h, w = hp - 4, wp - 2
    ho, wo = h // 2, w // 2
    wph = wp // 2                        # = wo + 1 (last pooled col is zero)
    xr = act.reshape(n, hp, wph, 2, c)                      # free reshape
    return pl.pallas_call(
        _maxpool_kernel,
        out_shape=jax.ShapeDtypeStruct((n, ho + 4, wo + 2, c), act.dtype),
        grid=(n,),
        in_specs=[pl.BlockSpec((1, hp, wph, 2, c),
                               lambda i: (i, 0, 0, 0, 0))],
        out_specs=pl.BlockSpec((1, ho + 4, wo + 2, c),
                               lambda i: (i, 0, 0, 0)),
        compiler_params=_PARAMS_1D,
    )(xr)


# -----------------------------------------------------------------------------
# PerceptualVGG model (VGG19 `features` prefix, deterministic synthetic weights)
# -----------------------------------------------------------------------------
def _vgg19_feature_cfg():
    cfg = [64, 64, "M", 128, 128, "M", 256, 256, 256, 256, "M",
           512, 512, 512, 512, "M", 512, 512, 512, 512, "M"]
    layers, in_c = [], 3
    for v in cfg:
        if v == "M":
            layers.append(("pool", None, None))
        else:
            layers.append(("conv", in_c, v))
            layers.append(("relu", None, None))
            in_c = v
    return layers


def _capture_nchw(act):
    # Crop the persistent layout back to (N, C, H, W) f32 for the output dict.
    hp, wp = act.shape[1], act.shape[2]
    h, w = hp - 4, wp - 2
    return jnp.transpose(act[:, 2:2 + h, :w, :], (0, 3, 1, 2)).astype(jnp.float32)


class PerceptualVGGPallas:
    def __init__(self, layer_name_list, use_input_norm=True, key=None):
        self.layer_name_list = list(layer_name_list)
        self.use_input_norm = use_input_norm
        num_layers = max(map(int, layer_name_list)) + 1
        cfg = _vgg19_feature_cfg()
        assert len(cfg) >= num_layers
        key = jax.random.PRNGKey(0) if key is None else key

        self.modules = []
        for idx, (kind, cin, cout) in enumerate(cfg[:num_layers]):
            name = str(idx)
            if kind == "conv":
                key, kw, kb = jax.random.split(key, 3)
                w = jax.random.normal(kw, (3, 3, cin, cout), jnp.float32)
                w = w / jnp.sqrt(9.0 * cin)
                b = 0.01 * jax.random.normal(kb, (cout,), jnp.float32)
                cin_p = ((cin + 7) // 8) * 8
                if cin_p != cin:
                    w = jnp.pad(w, ((0, 0), (0, 0), (0, cin_p - cin), (0, 0)))
                w9 = w.reshape(9, cin_p, cout).astype(jnp.bfloat16)
                b2 = b.reshape(1, cout)                     # keep bias f32
                self.modules.append((name, "conv", (w9, b2)))
            else:
                self.modules.append((name, kind, None))

        self.mean = jnp.array([0.485, 0.456, 0.406], jnp.float32)
        self.inv_std = 1.0 / jnp.array([0.229, 0.224, 0.225], jnp.float32)

    def __call__(self, x_nchw):
        # x_nchw: (n, c, h, w), values in [0, 1] (as the PyTorch module expects)
        x = jnp.transpose(x_nchw, (0, 2, 3, 1)).astype(jnp.float32)
        c = x.shape[-1]
        cp = 8
        if self.use_input_norm:
            mean, istd = self.mean, self.inv_std
        else:
            mean = jnp.zeros((c,), jnp.float32)
            istd = jnp.ones((c,), jnp.float32)
        x = jnp.pad(x, ((0, 0), (0, 0), (0, 0), (0, cp - c)))
        mean = jnp.pad(mean, (0, cp - c))
        istd = jnp.pad(istd, (0, cp - c))
        act = prep_input(x, mean, istd)

        output = {}
        idx = 0
        while idx < len(self.modules):
            name, kind, params = self.modules[idx]
            if kind == "conv":
                next_is_relu = (idx + 1 < len(self.modules)
                                and self.modules[idx + 1][1] == "relu")
                fuse = next_is_relu and (name not in self.layer_name_list)
                act = conv3x3(act, *params, apply_relu=fuse)
                if fuse:
                    relu_name = self.modules[idx + 1][0]
                    if relu_name in self.layer_name_list:
                        output[relu_name] = _capture_nchw(act)
                    idx += 2
                    continue
                if name in self.layer_name_list:
                    output[name] = _capture_nchw(act)
                idx += 1
                continue
            elif kind == "relu":
                act = relu(act)
            else:
                act = maxpool2x2(act)
            if name in self.layer_name_list:
                output[name] = _capture_nchw(act)
            idx += 1
        return output


# -----------------------------------------------------------------------------
# Pure-JAX reference (for correctness checking only; bf16-rounded per layer)
# -----------------------------------------------------------------------------
def _reference_forward(x_nchw, model):
    x = jnp.transpose(x_nchw, (0, 2, 3, 1)).astype(jnp.float32)
    if model.use_input_norm:
        x = (x - model.mean.reshape(1, 1, 1, 3)) * model.inv_std.reshape(1, 1, 1, 3)
    x = x.astype(jnp.bfloat16).astype(jnp.float32)
    out = {}
    for name, kind, params in model.modules:
        if kind == "conv":
            w9, b = params
            cin_p, cout = w9.shape[1], w9.shape[2]
            w = w9.astype(jnp.float32).reshape(3, 3, cin_p, cout)
            w = w[:, :, :x.shape[-1], :]
            x = lax.conv_general_dilated(
                x, w, window_strides=(1, 1), padding="SAME",
                dimension_numbers=("NHWC", "HWIO", "NHWC"),
                precision=lax.Precision.HIGHEST,
                preferred_element_type=jnp.float32) + b.reshape(1, 1, 1, cout)
        elif kind == "relu":
            x = jnp.maximum(x, 0.0)
        else:
            x = lax.reduce_window(x, -jnp.inf, lax.max,
                                  (1, 2, 2, 1), (1, 2, 2, 1), "VALID")
        x = x.astype(jnp.bfloat16).astype(jnp.float32)
        if name in model.layer_name_list:
            out[name] = jnp.transpose(x, (0, 3, 1, 2))
    return out


if __name__ == "__main__":
    import numpy as np

    key = jax.random.PRNGKey(0)
    kx, kp = jax.random.split(key)
    # (n, c, h, w) in [0, 1], 3 input channels as VGG expects.
    x = jax.random.uniform(kx, (2, 3, 16, 16), dtype=jnp.float32)

    # Capture conv0 (pre-ReLU), ReLU0, ReLU1, MaxPool -> layers 0, 1, 3, 4.
    model = PerceptualVGGPallas(layer_name_list=["0", "1", "3", "4"], key=kp)

    out = model(x)
    for name in model.layer_name_list:
        jax.block_until_ready(out[name])

    ref = _reference_forward(x, model)
    for name in model.layer_name_list:
        assert out[name].shape == ref[name].shape, (name, out[name].shape)
        np.testing.assert_allclose(np.asarray(out[name]), np.asarray(ref[name]),
                                   rtol=2e-2, atol=2e-2)

    print("KERNEL_OK")
</pallas_src>

<mosaic_0001>
module attributes {stable_mosaic.version = 11 : i64} {
  func.func @_prep_kernel(%arg0: i32, %arg1: memref<1x16x16x8xf32, #tpu.memory_space<vmem>>, %arg2: memref<1x1x1x8xf32, #tpu.memory_space<vmem>>, %arg3: memref<1x1x1x8xf32, #tpu.memory_space<vmem>>, %arg4: memref<1x20x18x8xbf16, #tpu.memory_space<vmem>>) attributes {dimension_semantics = [#tpu.dimension_semantics<parallel>], iteration_bounds = array<i64: 2>, scalar_prefetch = 0 : i64, scratch_operands = 0 : i64, tpu.core_type = #tpu.core_type<tc>, window_params = [{transform_indices = @transform_0, window_bounds = array<i64: 1, 16, 16, 8>}, {pipeline_mode = #tpu.pipeline_mode<synchronous>, transform_indices = @transform_1, window_bounds = array<i64: 1, 1, 1, 8>}, {pipeline_mode = #tpu.pipeline_mode<synchronous>, transform_indices = @transform_2, window_bounds = array<i64: 1, 1, 1, 8>}, {transform_indices = @transform_3, window_bounds = array<i64: 1, 20, 18, 8>}]} {
    %c0 = arith.constant 0 : index
    %c0_0 = arith.constant 0 : index
    %c0_1 = arith.constant 0 : index
    %c0_2 = arith.constant 0 : index
    %0 = vector.load %arg1[%c0, %c0_0, %c0_1, %c0_2] : memref<1x16x16x8xf32, #tpu.memory_space<vmem>>, vector<1x16x16x8xf32>
    %1 = vector.shape_cast %0 : vector<1x16x16x8xf32> to vector<16x16x8xf32>
    %c0_3 = arith.constant 0 : index
    %c0_4 = arith.constant 0 : index
    %c0_5 = arith.constant 0 : index
    %c0_6 = arith.constant 0 : index
    %2 = vector.load %arg2[%c0_3, %c0_4, %c0_5, %c0_6] : memref<1x1x1x8xf32, #tpu.memory_space<vmem>>, vector<1x1x1x8xf32>
    %3 = vector.shape_cast %2 : vector<1x1x1x8xf32> to vector<1x1x8xf32>
    %4 = vector.broadcast %3 : vector<1x1x8xf32> to vector<16x16x8xf32>
    %5 = arith.subf %1, %4 : vector<16x16x8xf32>
    %c0_7 = arith.constant 0 : index
    %c0_8 = arith.constant 0 : index
    %c0_9 = arith.constant 0 : index
    %c0_10 = arith.constant 0 : index
    %6 = vector.load %arg3[%c0_7, %c0_8, %c0_9, %c0_10] : memref<1x1x1x8xf32, #tpu.memory_space<vmem>>, vector<1x1x1x8xf32>
    %7 = vector.shape_cast %6 : vector<1x1x1x8xf32> to vector<1x1x8xf32>
    %8 = vector.broadcast %7 : vector<1x1x8xf32> to vector<16x16x8xf32>
    %9 = arith.mulf %5, %8 : vector<16x16x8xf32>
    %cst = arith.constant 0.000000e+00 : bf16
    %10 = vector.broadcast %cst : bf16 to vector<1x20x18x8xbf16>
    %c0_11 = arith.constant 0 : index
    %c0_12 = arith.constant 0 : index
    %c0_13 = arith.constant 0 : index
    %c0_14 = arith.constant 0 : index
    %11 = vector.load %arg4[%c0_11, %c0_12, %c0_13, %c0_14] : memref<1x20x18x8xbf16, #tpu.memory_space<vmem>>, vector<1x20x18x8xbf16>
    tpu.vector_store %arg4[%c0_11, %c0_12, %c0_13, %c0_14], %10 {strides = array<i32>} : memref<1x20x18x8xbf16, #tpu.memory_space<vmem>>, vector<1x20x18x8xbf16>,
    %12 = arith.truncf %9 : vector<16x16x8xf32> to vector<16x16x8xbf16>
    %c0_15 = arith.constant 0 : index
    %c2 = arith.constant 2 : index
    %c0_16 = arith.constant 0 : index
    %c0_17 = arith.constant 0 : index
    %13 = vector.load %arg4[%c0_15, %c2, %c0_16, %c0_17] : memref<1x20x18x8xbf16, #tpu.memory_space<vmem>>, vector<1x16x16x8xbf16>
    %14 = vector.shape_cast %13 : vector<1x16x16x8xbf16> to vector<16x16x8xbf16>
    %15 = vector.shape_cast %12 : vector<16x16x8xbf16> to vector<1x16x16x8xbf16>
    tpu.vector_store %arg4[%c0_15, %c2, %c0_16, %c0_17], %15 {strides = array<i32>} : memref<1x20x18x8xbf16, #tpu.memory_space<vmem>>, vector<1x16x16x8xbf16>,
    return
  }
  func.func @transform_0(%arg0: i32) -> (i32, i32, i32, i32) {
    %c0_i32 = arith.constant 0 : i32
    %c0_i32_0 = arith.constant 0 : i32
    %c0_i32_1 = arith.constant 0 : i32
    %c0_i32_2 = arith.constant 0 : i32
    return %arg0, %c0_i32, %c0_i32_0, %c0_i32_1 : i32, i32, i32, i32
  }
  func.func @transform_1(%arg0: i32) -> (i32, i32, i32, i32) {
    %c0_i32 = arith.constant 0 : i32
    %c0_i32_0 = arith.constant 0 : i32
    %c0_i32_1 = arith.constant 0 : i32
    %c0_i32_2 = arith.constant 0 : i32
    %c0_i32_3 = arith.constant 0 : i32
    return %c0_i32, %c0_i32_0, %c0_i32_1, %c0_i32_2 : i32, i32, i32, i32
  }
  func.func @transform_2(%arg0: i32) -> (i32, i32, i32, i32) {
    %c0_i32 = arith.constant 0 : i32
    %c0_i32_0 = arith.constant 0 : i32
    %c0_i32_1 = arith.constant 0 : i32
    %c0_i32_2 = arith.constant 0 : i32
    %c0_i32_3 = arith.constant 0 : i32
    return %c0_i32, %c0_i32_0, %c0_i32_1, %c0_i32_2 : i32, i32, i32, i32
  }
  func.func @transform_3(%arg0: i32) -> (i32, i32, i32, i32) {
    %c0_i32 = arith.constant 0 : i32
    %c0_i32_0 = arith.constant 0 : i32
    %c0_i32_1 = arith.constant 0 : i32
    %c0_i32_2 = arith.constant 0 : i32
    return %arg0, %c0_i32, %c0_i32_0, %c0_i32_1 : i32, i32, i32, i32
  }
}

</mosaic_0001>

<bundles_post_ra>
// kernel: tpu_custom_call.1
= control target key start
LH: loop header
LB: loop body
LE: loop exit
PB: predicated region body
PF: predicated region fallthrough
CT: control target
= control target key end

     0   :  { %s542_s12 = smov 0   ;;  %s917_s0 = inlined_call_operand.vmem [shape: f32[2,16,16,8], index: 0, kind: input, shape index: {}]   ;;  %s918_s1 = inlined_call_operand.vmem [shape: f32[1,1,1,8], index: 1, kind: input, shape index: {}]   ;;  %s919_s2 = inlined_call_operand.vmem [shape: f32[1,1,1,8], index: 2, kind: input, shape index: {}]   ;;  %s920_s3 = inlined_call_operand.vmem [shape: bf16[2,20,18,8], index: 3, kind: output, shape index: {}]  }
   0x1 LB: > { %s458_s13 = sadd.s32 4294967295, %s519_s12   ;;  %p462_p0 = scmp.ge.s32.totalorder %s519_s12, 1  ;;  %s519_s12 = sphi %s542_s12, %s13_s12  }
   0x2   : > { %p137_p1 = scmp.lt.s32.totalorder %s519_s12, 3 }
   0x4   : > { %p138_p2 = pnand %p462_p0, %p137_p1 }
   0x5   : > { %p161_p3 = scmp.lt.s32.totalorder (!%p138_p2), %s458_s13, 1 }
   0x6   : > { %141 = sbr.rel (%p138_p2) target bundleno = 107 (0x6b), region = 32 }
   0xb   : > { %s922_s13 = smov (!%p161_p3, %s458_s13), 1  ;;  %vm276_vm0 = vcmask 60416   ;;  %v521_v0 = vmov 0   ;;  %vm279_vm1 = vcmask 57344   ;;  %v702_v1 = vld [vmem:[%s918_s1] ss:$0 sm:$0xff] }
   0xc   : > { %s501_s14 = smul.u32 240, %s922_s13  ;;  %s500_s18 = sshll.u32 %s922_s13, 8  ;;  %v723_v6 = vld [vmem:[%s919_s2] ss:$0 sm:$0xff] }
   0xd   : > { %s691_s21 = scalar_lea.vmem %s917_s0, %s500_s18 }
   0xe   : > { %s556_s17 = scalar_lea.vmem %s920_s3, %s501_s14  ;;  %v172_v2 = vld [vmem:[%s691_s21] sm:$0xff]  ;;  %v173_v3 = vld [vmem:[%s691_s21 + $0x8] sm:$0xff]  ;;  %v174_v4 = vld [vmem:[%s691_s21 + $0x10] sm:$0xff] }
   0xf   : > { %284 = vst.msk [vmem:[%s556_s17 + $0x18] sm:$0xf] %vm276_vm0, %v521_v0  ;;  %v208_v5 = vsub.f32 %v172_v2, %v702_v1  ;;  %v175_v7 = vld [vmem:[%s691_s21 + $0x18] sm:$0xff]  ;;  %v209_v8 = vsub.f32 %v173_v3, %v702_v1  ;;  %v176_v9 = vld [vmem:[%s691_s21 + $0x20] sm:$0xff]  ;;  %v210_v10 = vsub.f32 %v174_v4, %v702_v1  ;;  %v177_v11 = vld [vmem:[%s691_s21 + $0x28] sm:$0xff] }
  0x10   : > { %277 = vst.msk [vmem:[%s556_s17] sm:$0xf] %vm276_vm0, %v521_v0  ;;  %v211_v12 = vsub.f32 %v175_v7, %v702_v1  ;;  %v178_v13 = vld [vmem:[%s691_s21 + $0x30] sm:$0xff]  ;;  %v212_v15 = vsub.f32 %v176_v9, %v702_v1  ;;  %v179_v16 = vld [vmem:[%s691_s21 + $0x38] sm:$0xff]  ;;  %v213_v18 = vsub.f32 %v177_v11, %v702_v1  ;;  %v180_v19 = vld [vmem:[%s691_s21 + $0x40] sm:$0xff] }
  0x11   : > { %278 = vst.msk [vmem:[%s556_s17 + $0x4] sm:$0xf] %vm276_vm0, %v521_v0  ;;  %v244_v14 = vmul.f32 %v723_v6, %v208_v5  ;;  %v245_v17 = vmul.f32 %v723_v6, %v209_v8  ;;  %v246_v20 = vmul.f32 %v723_v6, %v210_v10  ;;  %v214_v21 = vsub.f32 %v178_v13, %v702_v1  ;;  %v181_v22 = vld [vmem:[%s691_s21 + $0x48] sm:$0xff]  ;;  %v182_v25 = vld [vmem:[%s691_s21 + $0x50] sm:$0xff]  ;;  %v183_v29 = vld [vmem:[%s691_s21 + $0x58] sm:$0xff] }
  0x12   : > { %281 = vst.msk [vmem:[%s556_s17 + $0xc] sm:$0xf] %vm276_vm0, %v521_v0  ;;  %v247_v23 = vmul.f32 %v723_v6, %v211_v12  ;;  %v215_v24 = vsub.f32 %v179_v16, %v702_v1  ;;  %v248_v27 = vmul.f32 %v723_v6, %v212_v15  ;;  %v216_v28 = vsub.f32 %v180_v19, %v702_v1  ;;  %v184_v33 = vld [vmem:[%s691_s21 + $0x60] sm:$0xff]  ;;  %v185_v37 = vld [vmem:[%s691_s21 + $0x68] sm:$0xff]  ;;  %v186_v41 = vld [vmem:[%s691_s21 + $0x70] sm:$0xff] }
  0x13   : > { %282 = vst.msk [vmem:[%s556_s17 + $0x10] sm:$0xf] %vm276_vm0, %v521_v0  ;;  %v338_v26 = vpack.c.bf16 %v244_v14, %v244_v14  ;;  %v339_v30 = vpack.c.bf16 %v245_v17, %v245_v17  ;;  %v249_v31 = vmul.f32 %v723_v6, %v213_v18  ;;  %v217_v32 = vsub.f32 %v181_v22, %v702_v1  ;;  %v187_v45 = vld [vmem:[%s691_s21 + $0x78] sm:$0xff]  ;;  %v188_v49 = vld [vmem:[%s691_s21 + $0x80] sm:$0xff]  ;;  %v189_v53 = vld [vmem:[%s691_s21 + $0x88] sm:$0xff] }
  0x14   : > { %285 = vst.msk [vmem:[%s556_s17 + $0x1c] sm:$0xf] %vm276_vm0, %v521_v0  ;;  %v340_v34 = vpack.c.bf16 %v246_v20, %v246_v20  ;;  %v250_v35 = vmul.f32 %v723_v6, %v214_v21  ;;  %v218_v36 = vsub.f32 %v182_v25, %v702_v1  ;;  %v341_v38 = vpack.c.bf16 %v247_v23, %v247_v23  ;;  %v190_v57 = vld [vmem:[%s691_s21 + $0x90] sm:$0xff]  ;;  %v191_v61 = vld [vmem:[%s691_s21 + $0x98] sm:$0xff]  ;;  %v192_v2 = vld [vmem:[%s691_s21 + $0xa0] sm:$0xff] }
  0x15   : > { %287 = vst.msk [vmem:[%s556_s17 + $0x24] sm:$0xf] %vm276_vm0, %v521_v0  ;;  %v251_v39 = vmul.f32 %v723_v6, %v215_v24  ;;  %v219_v40 = vsub.f32 %v183_v29, %v702_v1  ;;  %v342_v42 = vpack.c.bf16 %v248_v27, %v248_v27  ;;  %v252_v43 = vmul.f32 %v723_v6, %v216_v28  ;;  %v193_v7 = vld [vmem:[%s691_s21 + $0xa8] sm:$0xff]  ;;  %v194_v11 = vld [vmem:[%s691_s21 + $0xb0] sm:$0xff]  ;;  %v195_v15 = vld [vmem:[%s691_s21 + $0xb8] sm:$0xff] }
  0x16   : > { %288 = vst.msk [vmem:[%s556_s17 + $0x28] sm:$0xf] %vm276_vm0, %v521_v0  ;;  %v220_v44 = vsub.f32 %v184_v33, %v702_v1  ;;  %v343_v46 = vpack.c.bf16 %v249_v31, %v249_v31  ;;  %v253_v47 = vmul.f32 %v723_v6, %v217_v32  ;;  %v221_v48 = vsub.f32 %v185_v37, %v702_v1  ;;  %v196_v19 = vld [vmem:[%s691_s21 + $0xc0] sm:$0xff]  ;;  %v197_v23 = vld [vmem:[%s691_s21 + $0xc8] sm:$0xff]  ;;  %v198_v27 = vld [vmem:[%s691_s21 + $0xd0] sm:$0xff] }
  0x17   : > { %290 = vst.msk [vmem:[%s556_s17 + $0x30] sm:$0xf] %vm276_vm0, %v521_v0  ;;  %v344_v50 = vpack.c.bf16 %v250_v35, %v250_v35  ;;  %v254_v51 = vmul.f32 %v723_v6, %v218_v36  ;;  %v222_v52 = vsub.f32 %v186_v41, %v702_v1  ;;  %v345_v54 = vpack.c.bf16 %v251_v39, %v251_v39  ;;  %v199_v31 = vld [vmem:[%s691_s21 + $0xd8] sm:$0xff]  ;;  %v200_v35 = vld [vmem:[%s691_s21 + $0xe0] sm:$0xff]  ;;  %v201_v39 = vld [vmem:[%s691_s21 + $0xe8] sm:$0xff] }
  0x18   : > { %291 = vst.msk [vmem:[%s556_s17 + $0x34] sm:$0xf] %vm276_vm0, %v521_v0  ;;  %v255_v55 = vmul.f32 %v723_v6, %v219_v40  ;;  %v223_v56 = vsub.f32 %v187_v45, %v702_v1  ;;  %v346_v58 = vpack.c.bf16 %v252_v43, %v252_v43  ;;  %v256_v59 = vmul.f32 %v723_v6, %v220_v44  ;;  %v202_v43 = vld [vmem:[%s691_s21 + $0xf0] sm:$0xff] }
  0x19   : > { %293 = vst.msk [vmem:[%s556_s17 + $0x3c] sm:$0xf] %vm276_vm0, %v521_v0  ;;  %v224_v60 = vsub.f32 %v188_v49, %v702_v1  ;;  %v347_v62 = vpack.c.bf16 %v253_v47, %v253_v47  ;;  %v257_v63 = vmul.f32 %v723_v6, %v221_v48  ;;  %v348_v3 = vpack.c.bf16 %v254_v51, %v254_v51  ;;  %v203_v47 = vld [vmem:[%s691_s21 + $0xf8] sm:$0xff] }
  0x1a   : > { %294 = vst.msk [vmem:[%s556_s17 + $0x40] sm:$0xf] %vm276_vm0, %v521_v0  ;;  %v258_v4 = vmul.f32 %v723_v6, %v222_v52  ;;  %v226_v5 = vsub.f32 %v190_v57, %v702_v1  ;;  %v349_v8 = vpack.c.bf16 %v255_v55, %v255_v55  ;;  %v259_v9 = vmul.f32 %v723_v6, %v223_v56 }
  0x1b   : > { %296 = vst.msk [vmem:[%s556_s17 + $0x48] sm:$0xf] %vm276_vm0, %v521_v0  ;;  %v227_v10 = vsub.f32 %v191_v61, %v702_v1  ;;  %v350_v12 = vpack.c.bf16 %v256_v59, %v256_v59  ;;  %v260_v13 = vmul.f32 %v723_v6, %v224_v60  ;;  %v228_v14 = vsub.f32 %v192_v2, %v702_v1 }
  0x1c   : > { %297 = vst.msk [vmem:[%s556_s17 + $0x4c] sm:$0xf] %vm276_vm0, %v521_v0  ;;  %v351_v16 = vpack.c.bf16 %v257_v63, %v257_v63  ;;  %v229_v18 = vsub.f32 %v193_v7, %v702_v1  ;;  %v352_v20 = vpack.c.bf16 %v258_v4, %v258_v4  ;;  %v262_v21 = vmul.f32 %v723_v6, %v226_v5 }
  0x1d   : > { %299 = vst.msk [vmem:[%s556_s17 + $0x54] sm:$0xf] %vm276_vm0, %v521_v0  ;;  %v230_v22 = vsub.f32 %v194_v11, %v702_v1  ;;  %v353_v24 = vpack.c.bf16 %v259_v9, %v259_v9  ;;  %v263_v25 = vmul.f32 %v723_v6, %v227_v10  ;;  %v354_v28 = vpack.c.bf16 %v260_v13, %v260_v13 }
  0x1e   : > { %300 = vst.msk [vmem:[%s556_s17 + $0x58] sm:$0xf] %vm276_vm0, %v521_v0  ;;  %v264_v29 = vmul.f32 %v723_v6, %v228_v14  ;;  %v265_v33 = vmul.f32 %v723_v6, %v229_v18  ;;  %v356_v36 = vpack.c.bf16 %v262_v21, %v262_v21  ;;  %v239_v56 = vsub.f32 %v203_v47, %v702_v1 }
  0x1f   : > { %302 = vst.msk [vmem:[%s556_s17 + $0x60] sm:$0xf] %vm276_vm0, %v521_v0  ;;  %v266_v37 = vmul.f32 %v723_v6, %v230_v22  ;;  %v357_v40 = vpack.c.bf16 %v263_v25, %v263_v25 }
  0x20   : > { %303 = vst.msk [vmem:[%s556_s17 + $0x64] sm:$0xf] %vm276_vm0, %v521_v0  ;;  %v358_v44 = vpack.c.bf16 %v264_v29, %v264_v29  ;;  %v359_v48 = vpack.c.bf16 %v265_v33, %v265_v33  ;;  %v275_v63 = vmul.f32 %v723_v6, %v239_v56 }
  0x21   : > { %305 = vst.msk [vmem:[%s556_s17 + $0x6c] sm:$0xf] %vm276_vm0, %v521_v0  ;;  %v360_v51 = vpack.c.bf16 %v266_v37, %v266_v37 }
  0x22   : > { %306 = vst.msk [vmem:[%s556_s17 + $0x70] sm:$0xf] %vm276_vm0, %v521_v0  ;;  %v369_v4 = vpack.c.bf16 %v275_v63, %v275_v63 }
  0x23   : > { %308 = vst.msk [vmem:[%s556_s17 + $0x78] sm:$0xf] %vm276_vm0, %v521_v0 }
  0x24   : > { %309 = vst.msk [vmem:[%s556_s17 + $0x7c] sm:$0xf] %vm276_vm0, %v521_v0 }
  0x25   : > { %311 = vst.msk [vmem:[%s556_s17 + $0x84] sm:$0xf] %vm276_vm0, %v521_v0 }
  0x26   : > { %312 = vst.msk [vmem:[%s556_s17 + $0x88] sm:$0xf] %vm276_vm0, %v521_v0 }
  0x27   : > { %314 = vst.msk [vmem:[%s556_s17 + $0x90] sm:$0xf] %vm276_vm0, %v521_v0 }
  0x28   : > { %315 = vst.msk [vmem:[%s556_s17 + $0x94] sm:$0xf] %vm276_vm0, %v521_v0 }
  0x29   : > { %317 = vst.msk [vmem:[%s556_s17 + $0x9c] sm:$0xf] %vm276_vm0, %v521_v0 }
  0x2a   : > { %318 = vst.msk [vmem:[%s556_s17 + $0xa0] sm:$0xf] %vm276_vm0, %v521_v0 }
  0x2b   : > { %320 = vst.msk [vmem:[%s556_s17 + $0xa8] sm:$0xf] %vm276_vm0, %v521_v0 }
  0x2c   : > { %321 = vst.msk [vmem:[%s556_s17 + $0xac] sm:$0xf] %vm276_vm0, %v521_v0 }
  0x2d   : > { %323 = vst.msk [vmem:[%s556_s17 + $0xb4] sm:$0xf] %vm276_vm0, %v521_v0 }
  0x2e   : > { %324 = vst.msk [vmem:[%s556_s17 + $0xb8] sm:$0xf] %vm276_vm0, %v521_v0 }
  0x2f   : > { %326 = vst.msk [vmem:[%s556_s17 + $0xc0] sm:$0xf] %vm276_vm0, %v521_v0 }
  0x30   : > { %327 = vst.msk [vmem:[%s556_s17 + $0xc4] sm:$0xf] %vm276_vm0, %v521_v0 }
  0x31   : > { %329 = vst.msk [vmem:[%s556_s17 + $0xcc] sm:$0xf] %vm276_vm0, %v521_v0 }
  0x32   : > { %330 = vst.msk [vmem:[%s556_s17 + $0xd0] sm:$0xf] %vm276_vm0, %v521_v0 }
  0x33   : > { %332 = vst.msk [vmem:[%s556_s17 + $0xd8] sm:$0xf] %vm276_vm0, %v521_v0 }
  0x34   : > { %333 = vst.msk [vmem:[%s556_s17 + $0xdc] sm:$0xf] %vm276_vm0, %v521_v0 }
  0x35   : > { %335 = vst.msk [vmem:[%s556_s17 + $0xe4] sm:$0xf] %vm276_vm0, %v521_v0 }
  0x36   : > { %336 = vst.msk [vmem:[%s556_s17 + $0xe8] sm:$0xf] %vm276_vm0, %v521_v0 }
  0x37   : > { %280 = vst.msk [vmem:[%s556_s17 + $0x8] sm:$0x1] %vm279_vm1, %v521_v0 }
  0x38   : > { %283 = vst.msk [vmem:[%s556_s17 + $0x14] sm:$0x1] %vm279_vm1, %v521_v0 }
  0x39   : > { %286 = vst.msk [vmem:[%s556_s17 + $0x20] sm:$0x1] %vm279_vm1, %v521_v0 }
  0x3a   : > { %289 = vst.msk [vmem:[%s556_s17 + $0x2c] sm:$0x1] %vm279_vm1, %v521_v0 }
  0x3b   : > { %292 = vst.msk [vmem:[%s556_s17 + $0x38] sm:$0x1] %vm279_vm1, %v521_v0 }
  0x3c   : > { %295 = vst.msk [vmem:[%s556_s17 + $0x44] sm:$0x1] %vm279_vm1, %v521_v0 }
  0x3d   : > { %298 = vst.msk [vmem:[%s556_s17 + $0x50] sm:$0x1] %vm279_vm1, %v521_v0 }
  0x3e   : > { %301 = vst.msk [vmem:[%s556_s17 + $0x5c] sm:$0x1] %vm279_vm1, %v521_v0 }
  0x3f   : > { %304 = vst.msk [vmem:[%s556_s17 + $0x68] sm:$0x1] %vm279_vm1, %v521_v0 }
  0x40   : > { %307 = vst.msk [vmem:[%s556_s17 + $0x74] sm:$0x1] %vm279_vm1, %v521_v0 }
  0x41   : > { %310 = vst.msk [vmem:[%s556_s17 + $0x80] sm:$0x1] %vm279_vm1, %v521_v0 }
  0x42   : > { %313 = vst.msk [vmem:[%s556_s17 + $0x8c] sm:$0x1] %vm279_vm1, %v521_v0 }
  0x43   : > { %316 = vst.msk [vmem:[%s556_s17 + $0x98] sm:$0x1] %vm279_vm1, %v521_v0 }
  0x44   : > { %319 = vst.msk [vmem:[%s556_s17 + $0xa4] sm:$0x1] %vm279_vm1, %v521_v0 }
  0x45   : > { %322 = vst.msk [vmem:[%s556_s17 + $0xb0] sm:$0x1] %vm279_vm1, %v521_v0 }
  0x46   : > { %325 = vst.msk [vmem:[%s556_s17 + $0xbc] sm:$0x1] %vm279_vm1, %v521_v0 }
  0x47   : > { %328 = vst.msk [vmem:[%s556_s17 + $0xc8] sm:$0x1] %vm279_vm1, %v521_v0 }
  0x48   : > { %331 = vst.msk [vmem:[%s556_s17 + $0xd4] sm:$0x1] %vm279_vm1, %v521_v0 }
  0x49   : > { %334 = vst.msk [vmem:[%s556_s17 + $0xe0] sm:$0x1] %vm279_vm1, %v521_v0 }
  0x4a   : > { %337 = vst.msk [vmem:[%s556_s17 + $0xec] sm:$0x1] %vm279_vm1, %v521_v0  ;;  %v225_v0 = vsub.f32 %v189_v53, %v702_v1  ;;  %v238_v53 = vsub.f32 %v202_v43, %v702_v1 }
  0x4b   : > { %466 = vst.msk [vmem:[%s556_s17 + $0x18] sm:$0xf] %vm276_vm0, %v338_v26  ;;  %v231_v26 = vsub.f32 %v195_v15, %v702_v1 }
  0x4c   : > { %467 = vst.msk [vmem:[%s556_s17 + $0x1c] sm:$0xf] %vm276_vm0, %v339_v30  ;;  %v261_v17 = vmul.f32 %v723_v6, %v225_v0  ;;  %v232_v30 = vsub.f32 %v196_v19, %v702_v1 }
  0x4d   : > { %468 = vst.msk [vmem:[%s556_s17 + $0x24] sm:$0xf] %vm276_vm0, %v340_v34  ;;  %v233_v34 = vsub.f32 %v197_v23, %v702_v1  ;;  %v267_v41 = vmul.f32 %v723_v6, %v231_v26 }
  0x4e   : > { %469 = vst.msk [vmem:[%s556_s17 + $0x28] sm:$0xf] %vm276_vm0, %v341_v38  ;;  %v355_v32 = vpack.c.bf16 %v261_v17, %v261_v17  ;;  %v234_v38 = vsub.f32 %v198_v27, %v702_v1  ;;  %v268_v45 = vmul.f32 %v723_v6, %v232_v30 }
  0x4f   : > { %470 = vst.msk [vmem:[%s556_s17 + $0x30] sm:$0xf] %vm276_vm0, %v342_v42  ;;  %v235_v42 = vsub.f32 %v199_v31, %v702_v1  ;;  %v269_v49 = vmul.f32 %v723_v6, %v233_v34 }
  0x50   : > { %471 = vst.msk [vmem:[%s556_s17 + $0x34] sm:$0xf] %vm276_vm0, %v343_v46  ;;  %v236_v46 = vsub.f32 %v200_v35, %v702_v1  ;;  %v270_v52 = vmul.f32 %v723_v6, %v234_v38  ;;  %v362_v57 = vpack.c.bf16 %v268_v45, %v268_v45 }
  0x51   : > { %472 = vst.msk [vmem:[%s556_s17 + $0x3c] sm:$0xf] %vm276_vm0, %v344_v50  ;;  %v237_v50 = vsub.f32 %v201_v39, %v702_v1  ;;  %v271_v55 = vmul.f32 %v723_v6, %v235_v42  ;;  %v363_v59 = vpack.c.bf16 %v269_v49, %v269_v49  ;;  %v274_v1 = vmul.f32 %v723_v6, %v238_v53 }
  0x52   : > { %473 = vst.msk [vmem:[%s556_s17 + $0x40] sm:$0xf] %vm276_vm0, %v345_v54  ;;  %v361_v54 = vpack.c.bf16 %v267_v41, %v267_v41  ;;  %v364_v61 = vpack.c.bf16 %v270_v52, %v270_v52 }
  0x53   : > { %474 = vst.msk [vmem:[%s556_s17 + $0x48] sm:$0xf] %vm276_vm0, %v346_v58  ;;  %v272_v58 = vmul.f32 %v723_v6, %v236_v46  ;;  %v273_v60 = vmul.f32 %v723_v6, %v237_v50 }
  0x54   : > { %475 = vst.msk [vmem:[%s556_s17 + $0x4c] sm:$0xf] %vm276_vm0, %v347_v62  ;;  %v365_v62 = vpack.c.bf16 %v271_v55, %v271_v55 }
  0x55   : > { %476 = vst.msk [vmem:[%s556_s17 + $0x54] sm:$0xf] %vm276_vm0, %v348_v3  ;;  %v366_v0 = vpack.c.bf16 %v272_v58, %v272_v58  ;;  %v367_v2 = vpack.c.bf16 %v273_v60, %v273_v60  ;;  %v368_v3 = vpack.c.bf16 %v274_v1, %v274_v1 }
  0x56   : > { %477 = vst.msk [vmem:[%s556_s17 + $0x58] sm:$0xf] %vm276_vm0, %v349_v8 }
  0x57   : > { %478 = vst.msk [vmem:[%s556_s17 + $0x60] sm:$0xf] %vm276_vm0, %v350_v12 }
  0x58   : > { %479 = vst.msk [vmem:[%s556_s17 + $0x64] sm:$0xf] %vm276_vm0, %v351_v16 }
  0x59   : > { %480 = vst.msk [vmem:[%s556_s17 + $0x6c] sm:$0xf] %vm276_vm0, %v352_v20 }
  0x5a   : > { %481 = vst.msk [vmem:[%s556_s17 + $0x70] sm:$0xf] %vm276_vm0, %v353_v24 }
  0x5b   : > { %482 = vst.msk [vmem:[%s556_s17 + $0x78] sm:$0xf] %vm276_vm0, %v354_v28 }
  0x5c   : > { %483 = vst.msk [vmem:[%s556_s17 + $0x7c] sm:$0xf] %vm276_vm0, %v355_v32 }
  0x5d   : > { %484 = vst.msk [vmem:[%s556_s17 + $0x84] sm:$0xf] %vm276_vm0, %v356_v36 }
  0x5e   : > { %485 = vst.msk [vmem:[%s556_s17 + $0x88] sm:$0xf] %vm276_vm0, %v357_v40 }
  0x5f   : > { %486 = vst.msk [vmem:[%s556_s17 + $0x90] sm:$0xf] %vm276_vm0, %v358_v44 }
  0x60   : > { %487 = vst.msk [vmem:[%s556_s17 + $0x94] sm:$0xf] %vm276_vm0, %v359_v48 }
  0x61   : > { %488 = vst.msk [vmem:[%s556_s17 + $0x9c] sm:$0xf] %vm276_vm0, %v360_v51 }
  0x62   : > { %489 = vst.msk [vmem:[%s556_s17 + $0xa0] sm:$0xf] %vm276_vm0, %v361_v54 }
  0x63   : > { %490 = vst.msk [vmem:[%s556_s17 + $0xa8] sm:$0xf] %vm276_vm0, %v362_v57 }
  0x64   : > { %491 = vst.msk [vmem:[%s556_s17 + $0xac] sm:$0xf] %vm276_vm0, %v363_v59 }
  0x65   : > { %492 = vst.msk [vmem:[%s556_s17 + $0xb4] sm:$0xf] %vm276_vm0, %v364_v61 }
  0x66   : > { %493 = vst.msk [vmem:[%s556_s17 + $0xb8] sm:$0xf] %vm276_vm0, %v365_v62 }
  0x67   : > { %494 = vst.msk [vmem:[%s556_s17 + $0xc0] sm:$0xf] %vm276_vm0, %v366_v0 }
  0x68   : > { %495 = vst.msk [vmem:[%s556_s17 + $0xc4] sm:$0xf] %vm276_vm0, %v367_v2 }
  0x69   : > { %496 = vst.msk [vmem:[%s556_s17 + $0xcc] sm:$0xf] %vm276_vm0, %v368_v3 }
  0x6a   : > { %497 = vst.msk [vmem:[%s556_s17 + $0xd0] sm:$0xf] %vm276_vm0, %v369_v4 }
  0x6b PF: > { %s13_s12 = sadd.s32 1, %s519_s12  }
  0x6c   : > { %p10_p4 = scmp.ge.s32.totalorder %s13_s12, 4  }
  0x6e   :  { %12 = sbr.rel (!%p10_p4) target bundleno = 1 (0x1), region = 63 }

</bundles_post_ra>
